<compile_context>
chip_gen: v6e
topology: v6e:2x2x1
jax: 0.10.0
libtpu: 0.0.40
codegen_flags: <defaults>
</compile_context>

<pallas_src>
import math

import jax
import jax.numpy as jnp
from jax.experimental import pallas as pl
from jax.experimental.pallas import tpu as pltpu

_TINY_FAST_PATH_BYTES = 64 * 1024


def _bias_add_kernel(x_ref, b_ref, o_ref):
    # x_ref: (tile_n, tile_d), b_ref: (1, tile_d) -- implicit sublane
    # broadcast of the single (already non-negative) bias row.  Pure VPU add.
    o_ref[...] = x_ref[...] + b_ref[...]


def _nonneg_bias_vector(bias_param, out_dtype):
    """ELU(bias) + 1 in f32 (expm1 to match torch.nn.ELU), cast to x dtype."""
    b = bias_param.astype(jnp.float32)
    nonneg = jnp.where(b > 0, b, jnp.expm1(b)) + 1.0
    return nonneg.astype(out_dtype)


def _chip_block_budget():
    """(target_block_bytes, vmem_limit_bytes) gated on the chip's VMEM size."""
    vmem_cap = 64 * 1024 * 1024  # conservative default (v7x-sized)
    try:
        info = pltpu.get_tpu_info()
        vmem_cap = int(getattr(info, "vmem_capacity_bytes", vmem_cap))
    except Exception:
        pass
    if vmem_cap >= 100 * 1024 * 1024:
        # v5e / v6e: 128 MiB physical VMEM -> big blocks are free.
        return 8 * 1024 * 1024, 64 * 1024 * 1024
    # v7x: 64 MiB physical VMEM -> 4 MiB blocks x 4 buffers = 16 MiB, safe.
    return 4 * 1024 * 1024, 32 * 1024 * 1024


def _row_pack_factor(n, d, max_packed_d=16384):
    """Rows to pack per slab so the last dim becomes a multiple of 128."""
    if d % 128 == 0:
        return 1
    r = 128 // math.gcd(d, 128)
    if r > 1 and n % r == 0 and r * d <= max_packed_d:
        return r
    return 1


def _pick_tile_d(d, itemsize, target_block_bytes):
    """Feature tile: full d when not lane-tileable or when a sublane-tall
    full-width block already fits the target; else a big multiple of 128."""
    if d % 128 != 0 or d * itemsize * 8 <= target_block_bytes:
        return d
    for cand in (4096, 2048, 1024, 512, 256, 128):
        if d % cand == 0 and cand * itemsize * 8 <= target_block_bytes:
            return cand
    return 128


def _pick_tile_n(n, tile_d, itemsize, target_block_bytes):
    """Row tile: as many rows as fit the target block, aligned to the dtype's
    sublane packing (8 f32, 16 bf16, 32 int8/fp8)."""
    sublane = 8 * max(1, 4 // itemsize)
    row_bytes = max(1, tile_d * itemsize)
    tile_n = max(sublane, target_block_bytes // row_bytes)
    if tile_n >= n:
        return n  # full dim is always a legal block shape
    return max(sublane, (tile_n // sublane) * sublane)


def nonneg_bias_forward(x, bias_param, *, block_bytes=None, vmem_limit_bytes=None):
    """x: (..., d), bias_param: (1, d) or (d,). Returns x + (ELU(bias) + 1)."""
    d = x.shape[-1]
    bias_param = bias_param.reshape(1, d)
    orig_shape = x.shape
    itemsize = jnp.dtype(x.dtype).itemsize

    # O(d) non-negativity transform, done once outside the O(n*d) stream.
    nonneg = _nonneg_bias_vector(bias_param, x.dtype)  # (1, d)

    x2 = x.reshape(-1, d)
    n = x2.shape[0]

    # Tiny-input fast path: let XLA fuse a trivial broadcast-add.
    if n * d * itemsize <= _TINY_FAST_PATH_BYTES:
        return (x2 + nonneg).reshape(orig_shape)

    # Lane-dense repack: pack r rows per slab when d is not a multiple of 128
    # so the output last dim is lane-dense (unmasked vst instead of vst.msk).
    r = _row_pack_factor(n, d)
    if r > 1:
        x2 = x2.reshape(n // r, r * d)
        nonneg = jnp.tile(nonneg, (1, r))
    n2, d2 = x2.shape

    target_block_bytes, default_vmem_limit = _chip_block_budget()
    if block_bytes is not None:
        target_block_bytes = block_bytes
    if vmem_limit_bytes is None:
        vmem_limit_bytes = default_vmem_limit

    tile_d = _pick_tile_d(d2, itemsize, target_block_bytes)
    tile_n = _pick_tile_n(n2, tile_d, itemsize, target_block_bytes)

    # j (feature tiles) outer / slow, i (rows) inner / fast: the bias block
    # index is constant along the inner axis, so its DMA is not re-issued.
    grid = (pl.cdiv(d2, tile_d), pl.cdiv(n2, tile_n))

    cost = pl.CostEstimate(
        flops=int(n2 * d2),
        transcendentals=0,  # ELU hoisted to the wrapper
        bytes_accessed=int((2 * n2 * d2 + d2) * itemsize),
    )

    out = pl.pallas_call(
        _bias_add_kernel,
        out_shape=jax.ShapeDtypeStruct((n2, d2), x2.dtype),
        grid_spec=pltpu.PrefetchScalarGridSpec(
            num_scalar_prefetch=0,
            grid=grid,
            in_specs=[
                pl.BlockSpec((tile_n, tile_d), lambda j, i: (i, j)),  # x tile
                pl.BlockSpec((1, tile_d), lambda j, i: (0, j)),       # bias row
            ],
            out_specs=pl.BlockSpec((tile_n, tile_d), lambda j, i: (i, j)),
        ),
        compiler_params=pltpu.CompilerParams(
            dimension_semantics=("parallel", "parallel"),
            vmem_limit_bytes=vmem_limit_bytes,
        ),
        cost_estimate=cost,
    )(x2, nonneg)

    return out.reshape(orig_shape)


def _reference(x, bias_param):
    b = bias_param.reshape(1, x.shape[-1]).astype(jnp.float32)
    nonneg = (jax.nn.elu(b) + 1.0).astype(x.dtype)
    return x + nonneg


if __name__ == "__main__":
    key = jax.random.PRNGKey(0)

    def run_case(name, x_shape, d, **kwargs):
        kx, kb = jax.random.split(jax.random.fold_in(key, hash(name) & 0xFFFF))
        x = jax.random.normal(kx, x_shape, dtype=jnp.float32)
        # PyTorch init is zeros(1, d); use small +/- values so both ELU
        # branches are exercised.
        bias_param = 0.5 * jax.random.normal(kb, (1, d), dtype=jnp.float32)
        out = jax.block_until_ready(nonneg_bias_forward(x, bias_param, **kwargs))
        ref = _reference(x, bias_param)
        assert out.shape == ref.shape, (name, out.shape, ref.shape)
        assert jnp.allclose(out, ref, atol=1e-5, rtol=1e-5), f"mismatch: {name}"

    # 1) Standard case, 3-D input broadcast over leading dims (kernel path).
    run_case("standard", (8, 64, 384), 384)
    # 2) Multi-block grid in both axes (forced small blocks to exercise tiling).
    run_case("tiled", (32, 2048), 2048, block_bytes=32 * 1024)
    # 3) Non-128-multiple d -> lane-dense row repack path.
    run_case("repack", (256, 100), 100)
    # 4) Tiny input -> plain-jnp fast path.
    run_case("tiny", (4, 32), 32)

    print("KERNEL_OK")
</pallas_src>

<mosaic_0001>
module attributes {stable_mosaic.version = 11 : i64} {
  func.func @_bias_add_kernel(%arg0: i32, %arg1: i32, %arg2: memref<512x384xf32, #tpu.memory_space<vmem>>, %arg3: memref<1x384xf32, #tpu.memory_space<vmem>>, %arg4: memref<512x384xf32, #tpu.memory_space<vmem>>) attributes {dimension_semantics = [#tpu.dimension_semantics<parallel>, #tpu.dimension_semantics<parallel>], iteration_bounds = array<i64: 1, 1>, scalar_prefetch = 0 : i64, scratch_operands = 0 : i64, tpu.core_type = #tpu.core_type<tc>, window_params = [{transform_indices = @transform_0, window_bounds = array<i64: 512, 384>}, {transform_indices = @transform_1, window_bounds = array<i64: 1, 384>}, {transform_indices = @transform_2, window_bounds = array<i64: 512, 384>}]} {
    %c0 = arith.constant 0 : index
    %c0_0 = arith.constant 0 : index
    %0 = vector.load %arg2[%c0, %c0_0] : memref<512x384xf32, #tpu.memory_space<vmem>>, vector<512x384xf32>
    %c0_1 = arith.constant 0 : index
    %c0_2 = arith.constant 0 : index
    %1 = vector.load %arg3[%c0_1, %c0_2] : memref<1x384xf32, #tpu.memory_space<vmem>>, vector<1x384xf32>
    %2 = vector.broadcast %1 : vector<1x384xf32> to vector<512x384xf32>
    %3 = arith.addf %0, %2 : vector<512x384xf32>
    %c0_3 = arith.constant 0 : index
    %c0_4 = arith.constant 0 : index
    %4 = vector.load %arg4[%c0_3, %c0_4] : memref<512x384xf32, #tpu.memory_space<vmem>>, vector<512x384xf32>
    tpu.vector_store %arg4[%c0_3, %c0_4], %3 {strides = array<i32>} : memref<512x384xf32, #tpu.memory_space<vmem>>, vector<512x384xf32>,
    return
  }
  func.func @transform_0(%arg0: i32, %arg1: i32) -> (i32, i32) {
    %c0_i32 = arith.constant 0 : i32
    return %arg1, %arg0 : i32, i32
  }
  func.func @transform_1(%arg0: i32, %arg1: i32) -> (i32, i32) {
    %c0_i32 = arith.constant 0 : i32
    %c0_i32_0 = arith.constant 0 : i32
    return %c0_i32, %arg0 : i32, i32
  }
  func.func @transform_2(%arg0: i32, %arg1: i32) -> (i32, i32) {
    %c0_i32 = arith.constant 0 : i32
    return %arg1, %arg0 : i32, i32
  }
}

</mosaic_0001>

<bundles_post_ra>
// kernel: tpu_custom_call.1
= control target key start
LH: loop header
LB: loop body
LE: loop exit
PB: predicated region body
PF: predicated region fallthrough
CT: control target
= control target key end

     0   :  { %7 = vsyncpa [#allocation3], 0  ;;  %s953_s0 = inlined_call_operand.hbm [shape: f32[512,384], index: 0, kind: input, shape index: {}]   ;;  %s954_s1 = inlined_call_operand.hbm [shape: f32[1,384], index: 1, kind: input, shape index: {}]   ;;  %s955_s2 = inlined_call_operand.hbm [shape: f32[512,384], index: 2, kind: output, shape index: {}]  }
   0x1   :  { %8 = vsyncpa [#allocation6], 0 }
   0x2   :  { %9 = vsyncpa [#allocation4], 0  ;;  %s720_s9 = smov [#allocation2]  }
   0x3   :  { %s15_s10 = sshll.u32 %s720_s9, 4  ;;  %s16_s10 = int_to_ptr.vmem [resolvable:$true] %s15_s10 }
   0x4   :  { %s662_s11 = scalar_lea.vmem %s16_s10, 24576  ;;  %p667_p1 = scmp.lt.s32.totalorder %s16_s10, %s16_s10 }
   0x5   :  { %p663_p0 = scmp.ne.s32.totalorder %s16_s10, %s662_s11  ;;  %p668_p2 = scmp.lt.s32.totalorder %s662_s11, %s662_s11 }
   0x7   :  { %p669_p3 = por %p668_p2, %p667_p1 }
   0x9   :  { %p670_p4 = pnand %p669_p3, %p663_p0 }
   0xb   :  { %673 = shalt.err (!%p670_p4)
}
   0xc   :  { %s721_s12 = smov 384   ;;  %s722_s13 = smov 24  }
   0xd   :  { %21 = dma.hbm_to_vmem [thread:$0]  %s953_s0, 24576, %s16_s10, [#allocation3], %s721_s12, %s721_s12, %s722_s13  }
   0xe   :  { %s723_s16 = smov [#allocation5]  }
   0xf   :  { %s28_s17 = sshll.u32 %s723_s16, 4  ;;  %s29_s17 = int_to_ptr.vmem [resolvable:$true] %s28_s17 }
  0x10   :  { %s682_s18 = scalar_lea.vmem %s29_s17, 48  ;;  %s686_s19 = scalar_lea.vmem %s29_s17, 64 }
  0x11   :  { %p683_p5 = scmp.ne.s32.totalorder %s29_s17, %s682_s18  ;;  %p687_p6 = scmp.lt.s32.totalorder %s29_s17, %s29_s17 }
  0x12   :  { %p688_p7 = scmp.lt.s32.totalorder %s686_s19, %s682_s18 }
  0x14   :  { %p689_p8 = por %p688_p7, %p687_p6 }
  0x16   :  { %p690_p9 = pnand %p689_p8, %p683_p5 }
  0x18   :  { %693 = shalt.err (!%p690_p9)
}
  0x19   :  { %31 = dma.hbm_to_vmem [thread:$0]  %s954_s1, 48, %s29_s17, [#allocation6]  }
  0x1a   :  { %714 = dma.done.wait [#allocation3], 24576  }
  0x1b   :  { %715 = vsyncadd [#allocation3], 4294942720 }
  0x1c   :  { %716 = dma.done.wait [#allocation6], 48  }
  0x1d   :  { %717 = vsyncadd [#allocation6], 4294967248  ;;  %v232_v0 = vlaneseq  ;;  %v38_v5 = vld [vmem:[#allocation2] sm:$0xff]  ;;  %v39_v7 = vld [vmem:[#allocation2 + $0x8] sm:$0xff]  ;;  %s724_s0 = smov [#allocation7]  }
  0x1e   :  { %v230_v6 = vld [vmem:[#allocation5] sm:$0x7]  ;;  %v40_v10 = vld [vmem:[#allocation2 + $0x10] sm:$0xff]  ;;  %v41_v12 = vld [vmem:[#allocation2 + $0x18] sm:$0xff]  ;;  %s636_s1 = sshll.u32 %s724_s0, 4  ;;  %s637_s1 = int_to_ptr.vmem [resolvable:$true] %s636_s1 }
  0x1f   :  { %v233_v1 = vshrl.u32 %v232_v0, 7  ;;  %v42_v13 = vld [vmem:[#allocation2 + $0x20] sm:$0xff]  ;;  %v43_v14 = vld [vmem:[#allocation2 + $0x28] sm:$0xff]  ;;  %v44_v15 = vld [vmem:[#allocation2 + $0x30] sm:$0xff]  ;;  %s694_s22 = scalar_lea.vmem %s637_s1, 24576  ;;  %p699_p11 = scmp.lt.s32.totalorder %s637_s1, %s637_s1 }
  0x20   :  { %v45_v16 = vld [vmem:[#allocation2 + $0x38] sm:$0xff]  ;;  %v46_v21 = vld [vmem:[#allocation2 + $0x40] sm:$0xff]  ;;  %v47_v22 = vld [vmem:[#allocation2 + $0x48] sm:$0xff]  ;;  %p695_p10 = scmp.ne.s32.totalorder %s637_s1, %s694_s22  ;;  %p700_p12 = scmp.lt.s32.totalorder %s694_s22, %s694_s22 }
  0x21   :  { %v234_v2 = vsub.s32 0, %v233_v1  ;;  %v238_v3 = vsub.s32 1, %v233_v1  ;;  %v242_v4 = vsub.s32 2, %v233_v1  ;;  %v48_v23 = vld [vmem:[#allocation2 + $0x50] sm:$0xff]  ;;  %v49_v28 = vld [vmem:[#allocation2 + $0x58] sm:$0xff]  ;;  %v50_v29 = vld [vmem:[#allocation2 + $0x60] sm:$0xff] }
  0x22   :  { %v51_v30 = vld [vmem:[#allocation2 + $0x68] sm:$0xff]  ;;  %v52_v35 = vld [vmem:[#allocation2 + $0x70] sm:$0xff]  ;;  %v53_v36 = vld [vmem:[#allocation2 + $0x78] sm:$0xff]  ;;  %p701_p13 = por %p700_p12, %p699_p11 }
  0x23   :  { %v749_v8 = vrot.slane %v230_v6, %v234_v2  ;;  %v751_v9 = vrot.slane %v230_v6, %v238_v3  ;;  %v753_v11 = vrot.slane %v230_v6, %v242_v4  ;;  %v54_v37 = vld [vmem:[#allocation2 + $0x80] sm:$0xff]  ;;  %v55_v42 = vld [vmem:[#allocation2 + $0x88] sm:$0xff]  ;;  %v56_v43 = vld [vmem:[#allocation2 + $0x90] sm:$0xff] }
  0x24   :  { %v57_v44 = vld [vmem:[#allocation2 + $0x98] sm:$0xff]  ;;  %v58_v49 = vld [vmem:[#allocation2 + $0xa0] sm:$0xff]  ;;  %v59_v50 = vld [vmem:[#allocation2 + $0xa8] sm:$0xff]  ;;  %p702_p0 = pnand %p701_p13, %p695_p10 }
  0x25   :  { %v247_v17 = vadd.f32 %v749_v8, %v38_v5  ;;  %v248_v18 = vadd.f32 %v751_v9, %v39_v7  ;;  %v249_v19 = vadd.f32 %v753_v11, %v40_v10  ;;  %v250_v20 = vadd.f32 %v749_v8, %v41_v12  ;;  %v60_v51 = vld [vmem:[#allocation2 + $0xb0] sm:$0xff]  ;;  %v61_v55 = vld [vmem:[#allocation2 + $0xb8] sm:$0xff]  ;;  %v62_v56 = vld [vmem:[#allocation2 + $0xc0] sm:$0xff] }
  0x26   :  { %v251_v24 = vadd.f32 %v751_v9, %v42_v13  ;;  %v252_v25 = vadd.f32 %v753_v11, %v43_v14  ;;  %v253_v26 = vadd.f32 %v749_v8, %v44_v15  ;;  %v254_v27 = vadd.f32 %v751_v9, %v45_v16  ;;  %v63_v57 = vld [vmem:[#allocation2 + $0xc8] sm:$0xff]  ;;  %v64_v61 = vld [vmem:[#allocation2 + $0xd0] sm:$0xff]  ;;  %v65_v62 = vld [vmem:[#allocation2 + $0xd8] sm:$0xff] }
  0x27   :  { %439 = vst [vmem:[#allocation7] sm:$0xff] %v247_v17  ;;  %440 = vst [vmem:[#allocation7 + $0x8] sm:$0xff] %v248_v18  ;;  %v255_v31 = vadd.f32 %v753_v11, %v46_v21  ;;  %v256_v32 = vadd.f32 %v749_v8, %v47_v22  ;;  %v257_v33 = vadd.f32 %v751_v9, %v48_v23  ;;  %v66_v63 = vld [vmem:[#allocation2 + $0xe0] sm:$0xff]  ;;  %v67_v3 = vld [vmem:[#allocation2 + $0xe8] sm:$0xff] }
  0x28   :  { %441 = vst [vmem:[#allocation7 + $0x10] sm:$0xff] %v249_v19  ;;  %442 = vst [vmem:[#allocation7 + $0x18] sm:$0xff] %v250_v20  ;;  %v258_v34 = vadd.f32 %v753_v11, %v49_v28  ;;  %v259_v38 = vadd.f32 %v749_v8, %v50_v29  ;;  %v260_v39 = vadd.f32 %v751_v9, %v51_v30  ;;  %v68_v4 = vld [vmem:[#allocation2 + $0xf0] sm:$0xff]  ;;  %v69_v5 = vld [vmem:[#allocation2 + $0xf8] sm:$0xff] }
  0x29   :  { %443 = vst [vmem:[#allocation7 + $0x20] sm:$0xff] %v251_v24  ;;  %444 = vst [vmem:[#allocation7 + $0x28] sm:$0xff] %v252_v25  ;;  %v261_v40 = vadd.f32 %v753_v11, %v52_v35  ;;  %v262_v41 = vadd.f32 %v749_v8, %v53_v36  ;;  %v263_v45 = vadd.f32 %v751_v9, %v54_v37  ;;  %v70_v12 = vld [vmem:[#allocation2 + $0x100] sm:$0xff]  ;;  %v71_v13 = vld [vmem:[#allocation2 + $0x108] sm:$0xff] }
  0x2a   :  { %445 = vst [vmem:[#allocation7 + $0x30] sm:$0xff] %v253_v26  ;;  %446 = vst [vmem:[#allocation7 + $0x38] sm:$0xff] %v254_v27  ;;  %v264_v46 = vadd.f32 %v753_v11, %v55_v42  ;;  %v265_v47 = vadd.f32 %v749_v8, %v56_v43  ;;  %v266_v48 = vadd.f32 %v751_v9, %v57_v44  ;;  %v72_v14 = vld [vmem:[#allocation2 + $0x110] sm:$0xff]  ;;  %v73_v18 = vld [vmem:[#allocation2 + $0x118] sm:$0xff] }
  0x2b   :  { %447 = vst [vmem:[#allocation7 + $0x40] sm:$0xff] %v255_v31  ;;  %448 = vst [vmem:[#allocation7 + $0x48] sm:$0xff] %v256_v32  ;;  %v267_v52 = vadd.f32 %v753_v11, %v58_v49  ;;  %v268_v53 = vadd.f32 %v749_v8, %v59_v50  ;;  %v269_v54 = vadd.f32 %v751_v9, %v60_v51  ;;  %v74_v19 = vld [vmem:[#allocation2 + $0x120] sm:$0xff]  ;;  %v75_v20 = vld [vmem:[#allocation2 + $0x128] sm:$0xff] }
  0x2c   :  { %449 = vst [vmem:[#allocation7 + $0x50] sm:$0xff] %v257_v33  ;;  %450 = vst [vmem:[#allocation7 + $0x58] sm:$0xff] %v258_v34  ;;  %v270_v58 = vadd.f32 %v753_v11, %v61_v55  ;;  %v271_v59 = vadd.f32 %v749_v8, %v62_v56  ;;  %v272_v60 = vadd.f32 %v751_v9, %v63_v57  ;;  %v76_v24 = vld [vmem:[#allocation2 + $0x130] sm:$0xff]  ;;  %v77_v25 = vld [vmem:[#allocation2 + $0x138] sm:$0xff] }
  0x2d   :  { %451 = vst [vmem:[#allocation7 + $0x60] sm:$0xff] %v259_v38  ;;  %452 = vst [vmem:[#allocation7 + $0x68] sm:$0xff] %v260_v39  ;;  %v273_v0 = vadd.f32 %v753_v11, %v64_v61  ;;  %v274_v1 = vadd.f32 %v749_v8, %v65_v62  ;;  %v275_v2 = vadd.f32 %v751_v9, %v66_v63  ;;  %v78_v26 = vld [vmem:[#allocation2 + $0x140] sm:$0xff]  ;;  %v79_v30 = vld [vmem:[#allocation2 + $0x148] sm:$0xff] }
  0x2e   :  { %453 = vst [vmem:[#allocation7 + $0x70] sm:$0xff] %v261_v40  ;;  %454 = vst [vmem:[#allocation7 + $0x78] sm:$0xff] %v262_v41  ;;  %v276_v6 = vadd.f32 %v753_v11, %v67_v3  ;;  %v277_v7 = vadd.f32 %v749_v8, %v68_v4  ;;  %v278_v10 = vadd.f32 %v751_v9, %v69_v5  ;;  %v80_v31 = vld [vmem:[#allocation2 + $0x150] sm:$0xff]  ;;  %v81_v32 = vld [vmem:[#allocation2 + $0x158] sm:$0xff] }
  0x2f   :  { %455 = vst [vmem:[#allocation7 + $0x80] sm:$0xff] %v263_v45  ;;  %456 = vst [vmem:[#allocation7 + $0x88] sm:$0xff] %v264_v46  ;;  %v279_v15 = vadd.f32 %v753_v11, %v70_v12  ;;  %v280_v16 = vadd.f32 %v749_v8, %v71_v13  ;;  %v281_v17 = vadd.f32 %v751_v9, %v72_v14  ;;  %v82_v36 = vld [vmem:[#allocation2 + $0x160] sm:$0xff]  ;;  %v83_v37 = vld [vmem:[#allocation2 + $0x168] sm:$0xff] }
  0x30   :  { %457 = vst [vmem:[#allocation7 + $0x90] sm:$0xff] %v265_v47  ;;  %458 = vst [vmem:[#allocation7 + $0x98] sm:$0xff] %v266_v48  ;;  %v282_v21 = vadd.f32 %v753_v11, %v73_v18  ;;  %v283_v22 = vadd.f32 %v749_v8, %v74_v19  ;;  %v284_v23 = vadd.f32 %v751_v9, %v75_v20  ;;  %v84_v38 = vld [vmem:[#allocation2 + $0x170] sm:$0xff]  ;;  %v85_v42 = vld [vmem:[#allocation2 + $0x178] sm:$0xff] }
  0x31   :  { %459 = vst [vmem:[#allocation7 + $0xa0] sm:$0xff] %v267_v52  ;;  %460 = vst [vmem:[#allocation7 + $0xa8] sm:$0xff] %v268_v53  ;;  %v285_v27 = vadd.f32 %v753_v11, %v76_v24  ;;  %v286_v28 = vadd.f32 %v749_v8, %v77_v25  ;;  %v287_v29 = vadd.f32 %v751_v9, %v78_v26  ;;  %v86_v43 = vld [vmem:[#allocation2 + $0x180] sm:$0xff]  ;;  %v87_v44 = vld [vmem:[#allocation2 + $0x188] sm:$0xff] }
  0x32   :  { %461 = vst [vmem:[#allocation7 + $0xb0] sm:$0xff] %v269_v54  ;;  %462 = vst [vmem:[#allocation7 + $0xb8] sm:$0xff] %v270_v58  ;;  %v288_v33 = vadd.f32 %v753_v11, %v79_v30  ;;  %v289_v34 = vadd.f32 %v749_v8, %v80_v31  ;;  %v290_v35 = vadd.f32 %v751_v9, %v81_v32  ;;  %v88_v48 = vld [vmem:[#allocation2 + $0x190] sm:$0xff]  ;;  %v89_v49 = vld [vmem:[#allocation2 + $0x198] sm:$0xff] }
  0x33   :  { %463 = vst [vmem:[#allocation7 + $0xc0] sm:$0xff] %v271_v59  ;;  %464 = vst [vmem:[#allocation7 + $0xc8] sm:$0xff] %v272_v60  ;;  %v291_v39 = vadd.f32 %v753_v11, %v82_v36  ;;  %v292_v40 = vadd.f32 %v749_v8, %v83_v37  ;;  %v293_v41 = vadd.f32 %v751_v9, %v84_v38  ;;  %v90_v50 = vld [vmem:[#allocation2 + $0x1a0] sm:$0xff]  ;;  %v91_v54 = vld [vmem:[#allocation2 + $0x1a8] sm:$0xff] }
  0x34   :  { %465 = vst [vmem:[#allocation7 + $0xd0] sm:$0xff] %v273_v0  ;;  %466 = vst [vmem:[#allocation7 + $0xd8] sm:$0xff] %v274_v1  ;;  %v294_v45 = vadd.f32 %v753_v11, %v85_v42  ;;  %v295_v46 = vadd.f32 %v749_v8, %v86_v43  ;;  %v296_v47 = vadd.f32 %v751_v9, %v87_v44  ;;  %v92_v55 = vld [vmem:[#allocation2 + $0x1b0] sm:$0xff]  ;;  %v93_v56 = vld [vmem:[#allocation2 + $0x1b8] sm:$0xff] }
  0x35   :  { %467 = vst [vmem:[#allocation7 + $0xe0] sm:$0xff] %v275_v2  ;;  %468 = vst [vmem:[#allocation7 + $0xe8] sm:$0xff] %v276_v6  ;;  %v297_v51 = vadd.f32 %v753_v11, %v88_v48  ;;  %v298_v52 = vadd.f32 %v749_v8, %v89_v49  ;;  %v299_v53 = vadd.f32 %v751_v9, %v90_v50  ;;  %v94_v60 = vld [vmem:[#allocation2 + $0x1c0] sm:$0xff]  ;;  %v95_v61 = vld [vmem:[#allocation2 + $0x1c8] sm:$0xff] }
  0x36   :  { %469 = vst [vmem:[#allocation7 + $0xf0] sm:$0xff] %v277_v7  ;;  %470 = vst [vmem:[#allocation7 + $0xf8] sm:$0xff] %v278_v10  ;;  %v300_v57 = vadd.f32 %v753_v11, %v91_v54  ;;  %v301_v58 = vadd.f32 %v749_v8, %v92_v55  ;;  %v302_v59 = vadd.f32 %v751_v9, %v93_v56  ;;  %v96_v62 = vld [vmem:[#allocation2 + $0x1d0] sm:$0xff]  ;;  %v97_v2 = vld [vmem:[#allocation2 + $0x1d8] sm:$0xff] }
  0x37   :  { %471 = vst [vmem:[#allocation7 + $0x100] sm:$0xff] %v279_v15  ;;  %472 = vst [vmem:[#allocation7 + $0x108] sm:$0xff] %v280_v16  ;;  %v303_v63 = vadd.f32 %v753_v11, %v94_v60  ;;  %v304_v0 = vadd.f32 %v749_v8, %v95_v61  ;;  %v305_v1 = vadd.f32 %v751_v9, %v96_v62  ;;  %v98_v3 = vld [vmem:[#allocation2 + $0x1e0] sm:$0xff]  ;;  %v99_v4 = vld [vmem:[#allocation2 + $0x1e8] sm:$0xff] }
  0x38   :  { %473 = vst [vmem:[#allocation7 + $0x110] sm:$0xff] %v281_v17  ;;  %474 = vst [vmem:[#allocation7 + $0x118] sm:$0xff] %v282_v21  ;;  %v306_v5 = vadd.f32 %v753_v11, %v97_v2  ;;  %v307_v6 = vadd.f32 %v749_v8, %v98_v3  ;;  %v308_v7 = vadd.f32 %v751_v9, %v99_v4  ;;  %v100_v10 = vld [vmem:[#allocation2 + $0x1f0] sm:$0xff]  ;;  %v101_v12 = vld [vmem:[#allocation2 + $0x1f8] sm:$0xff] }
  0x39   :  { %475 = vst [vmem:[#allocation7 + $0x120] sm:$0xff] %v283_v22  ;;  %476 = vst [vmem:[#allocation7 + $0x128] sm:$0xff] %v284_v23  ;;  %v102_v13 = vld [vmem:[#allocation2 + $0x200] sm:$0xff]  ;;  %v309_v14 = vadd.f32 %v753_v11, %v100_v10  ;;  %v310_v15 = vadd.f32 %v749_v8, %v101_v12  ;;  %v103_v17 = vld [vmem:[#allocation2 + $0x208] sm:$0xff] }
  0x3a   :  { %477 = vst [vmem:[#allocation7 + $0x130] sm:$0xff] %v285_v27  ;;  %478 = vst [vmem:[#allocation7 + $0x138] sm:$0xff] %v286_v28  ;;  %v311_v16 = vadd.f32 %v751_v9, %v102_v13  ;;  %v104_v18 = vld [vmem:[#allocation2 + $0x210] sm:$0xff]  ;;  %v105_v19 = vld [vmem:[#allocation2 + $0x218] sm:$0xff]  ;;  %v312_v20 = vadd.f32 %v753_v11, %v103_v17 }
  0x3b   :  { %479 = vst [vmem:[#allocation7 + $0x140] sm:$0xff] %v287_v29  ;;  %480 = vst [vmem:[#allocation7 + $0x148] sm:$0xff] %v288_v33  ;;  %v313_v21 = vadd.f32 %v749_v8, %v104_v18  ;;  %v314_v22 = vadd.f32 %v751_v9, %v105_v19  ;;  %v106_v23 = vld [vmem:[#allocation2 + $0x220] sm:$0xff]  ;;  %v107_v24 = vld [vmem:[#allocation2 + $0x228] sm:$0xff] }
  0x3c   :  { %481 = vst [vmem:[#allocation7 + $0x150] sm:$0xff] %v289_v34  ;;  %482 = vst [vmem:[#allocation7 + $0x158] sm:$0xff] %v290_v35  ;;  %v108_v25 = vld [vmem:[#allocation2 + $0x230] sm:$0xff]  ;;  %v315_v26 = vadd.f32 %v753_v11, %v106_v23  ;;  %v316_v27 = vadd.f32 %v749_v8, %v107_v24  ;;  %v109_v29 = vld [vmem:[#allocation2 + $0x238] sm:$0xff] }
  0x3d   :  { %483 = vst [vmem:[#allocation7 + $0x160] sm:$0xff] %v291_v39  ;;  %484 = vst [vmem:[#allocation7 + $0x168] sm:$0xff] %v292_v40  ;;  %v317_v28 = vadd.f32 %v751_v9, %v108_v25  ;;  %v110_v30 = vld [vmem:[#allocation2 + $0x240] sm:$0xff]  ;;  %v111_v31 = vld [vmem:[#allocation2 + $0x248] sm:$0xff]  ;;  %v318_v32 = vadd.f32 %v753_v11, %v109_v29 }
  0x3e   :  { %485 = vst [vmem:[#allocation7 + $0x170] sm:$0xff] %v293_v41  ;;  %486 = vst [vmem:[#allocation7 + $0x178] sm:$0xff] %v294_v45  ;;  %v319_v33 = vadd.f32 %v749_v8, %v110_v30  ;;  %v320_v34 = vadd.f32 %v751_v9, %v111_v31  ;;  %v112_v35 = vld [vmem:[#allocation2 + $0x250] sm:$0xff]  ;;  %v113_v36 = vld [vmem:[#allocation2 + $0x258] sm:$0xff] }
  0x3f   :  { %487 = vst [vmem:[#allocation7 + $0x180] sm:$0xff] %v295_v46  ;;  %488 = vst [vmem:[#allocation7 + $0x188] sm:$0xff] %v296_v47  ;;  %v114_v37 = vld [vmem:[#allocation2 + $0x260] sm:$0xff]  ;;  %v321_v38 = vadd.f32 %v753_v11, %v112_v35  ;;  %v322_v39 = vadd.f32 %v749_v8, %v113_v36  ;;  %v115_v41 = vld [vmem:[#allocation2 + $0x268] sm:$0xff] }
  0x40   :  { %489 = vst [vmem:[#allocation7 + $0x190] sm:$0xff] %v297_v51  ;;  %490 = vst [vmem:[#allocation7 + $0x198] sm:$0xff] %v298_v52  ;;  %v323_v40 = vadd.f32 %v751_v9, %v114_v37  ;;  %v116_v42 = vld [vmem:[#allocation2 + $0x270] sm:$0xff]  ;;  %v117_v43 = vld [vmem:[#allocation2 + $0x278] sm:$0xff]  ;;  %v324_v44 = vadd.f32 %v753_v11, %v115_v41 }
  0x41   :  { %491 = vst [vmem:[#allocation7 + $0x1a0] sm:$0xff] %v299_v53  ;;  %492 = vst [vmem:[#allocation7 + $0x1a8] sm:$0xff] %v300_v57  ;;  %v325_v45 = vadd.f32 %v749_v8, %v116_v42  ;;  %v326_v46 = vadd.f32 %v751_v9, %v117_v43  ;;  %v118_v47 = vld [vmem:[#allocation2 + $0x280] sm:$0xff]  ;;  %v119_v48 = vld [vmem:[#allocation2 + $0x288] sm:$0xff] }
  0x42   :  { %493 = vst [vmem:[#allocation7 + $0x1b0] sm:$0xff] %v301_v58  ;;  %494 = vst [vmem:[#allocation7 + $0x1b8] sm:$0xff] %v302_v59  ;;  %v120_v49 = vld [vmem:[#allocation2 + $0x290] sm:$0xff]  ;;  %v327_v50 = vadd.f32 %v753_v11, %v118_v47  ;;  %v328_v51 = vadd.f32 %v749_v8, %v119_v48  ;;  %v121_v53 = vld [vmem:[#allocation2 + $0x298] sm:$0xff] }
  0x43   :  { %495 = vst [vmem:[#allocation7 + $0x1c0] sm:$0xff] %v303_v63  ;;  %496 = vst [vmem:[#allocation7 + $0x1c8] sm:$0xff] %v304_v0  ;;  %v329_v52 = vadd.f32 %v751_v9, %v120_v49  ;;  %v122_v54 = vld [vmem:[#allocation2 + $0x2a0] sm:$0xff]  ;;  %v123_v55 = vld [vmem:[#allocation2 + $0x2a8] sm:$0xff]  ;;  %v330_v56 = vadd.f32 %v753_v11, %v121_v53 }
  0x44   :  { %497 = vst [vmem:[#allocation7 + $0x1d0] sm:$0xff] %v305_v1  ;;  %498 = vst [vmem:[#allocation7 + $0x1d8] sm:$0xff] %v306_v5  ;;  %v331_v57 = vadd.f32 %v749_v8, %v122_v54  ;;  %v332_v58 = vadd.f32 %v751_v9, %v123_v55  ;;  %v124_v59 = vld [vmem:[#allocation2 + $0x2b0] sm:$0xff]  ;;  %v125_v60 = vld [vmem:[#allocation2 + $0x2b8] sm:$0xff] }
  0x45   :  { %499 = vst [vmem:[#allocation7 + $0x1e0] sm:$0xff] %v307_v6  ;;  %500 = vst [vmem:[#allocation7 + $0x1e8] sm:$0xff] %v308_v7  ;;  %v126_v61 = vld [vmem:[#allocation2 + $0x2c0] sm:$0xff]  ;;  %v333_v62 = vadd.f32 %v753_v11, %v124_v59  ;;  %v334_v63 = vadd.f32 %v749_v8, %v125_v60  ;;  %v127_v1 = vld [vmem:[#allocation2 + $0x2c8] sm:$0xff] }
  0x46   :  { %501 = vst [vmem:[#allocation7 + $0x1f0] sm:$0xff] %v309_v14  ;;  %502 = vst [vmem:[#allocation7 + $0x1f8] sm:$0xff] %v310_v15  ;;  %v335_v0 = vadd.f32 %v751_v9, %v126_v61  ;;  %v128_v2 = vld [vmem:[#allocation2 + $0x2d0] sm:$0xff]  ;;  %v129_v3 = vld [vmem:[#allocation2 + $0x2d8] sm:$0xff]  ;;  %v336_v4 = vadd.f32 %v753_v11, %v127_v1 }
  0x47   :  { %503 = vst [vmem:[#allocation7 + $0x200] sm:$0xff] %v311_v16  ;;  %504 = vst [vmem:[#allocation7 + $0x208] sm:$0xff] %v312_v20  ;;  %v337_v5 = vadd.f32 %v749_v8, %v128_v2  ;;  %v338_v6 = vadd.f32 %v751_v9, %v129_v3  ;;  %v130_v7 = vld [vmem:[#allocation2 + $0x2e0] sm:$0xff]  ;;  %v131_v10 = vld [vmem:[#allocation2 + $0x2e8] sm:$0xff] }
  0x48   :  { %505 = vst [vmem:[#allocation7 + $0x210] sm:$0xff] %v313_v21  ;;  %506 = vst [vmem:[#allocation7 + $0x218] sm:$0xff] %v314_v22  ;;  %v132_v12 = vld [vmem:[#allocation2 + $0x2f0] sm:$0xff]  ;;  %v339_v13 = vadd.f32 %v753_v11, %v130_v7  ;;  %v340_v14 = vadd.f32 %v749_v8, %v131_v10  ;;  %v133_v16 = vld [vmem:[#allocation2 + $0x2f8] sm:$0xff] }
  0x49   :  { %507 = vst [vmem:[#allocation7 + $0x220] sm:$0xff] %v315_v26  ;;  %508 = vst [vmem:[#allocation7 + $0x228] sm:$0xff] %v316_v27  ;;  %v341_v15 = vadd.f32 %v751_v9, %v132_v12  ;;  %v134_v17 = vld [vmem:[#allocation2 + $0x300] sm:$0xff]  ;;  %v135_v18 = vld [vmem:[#allocation2 + $0x308] sm:$0xff]  ;;  %v342_v19 = vadd.f32 %v753_v11, %v133_v16 }
  0x4a   :  { %509 = vst [vmem:[#allocation7 + $0x230] sm:$0xff] %v317_v28  ;;  %510 = vst [vmem:[#allocation7 + $0x238] sm:$0xff] %v318_v32  ;;  %v343_v20 = vadd.f32 %v749_v8, %v134_v17  ;;  %v344_v21 = vadd.f32 %v751_v9, %v135_v18  ;;  %v136_v22 = vld [vmem:[#allocation2 + $0x310] sm:$0xff]  ;;  %v137_v23 = vld [vmem:[#allocation2 + $0x318] sm:$0xff] }
  0x4b   :  { %511 = vst [vmem:[#allocation7 + $0x240] sm:$0xff] %v319_v33  ;;  %512 = vst [vmem:[#allocation7 + $0x248] sm:$0xff] %v320_v34  ;;  %v138_v24 = vld [vmem:[#allocation2 + $0x320] sm:$0xff]  ;;  %v345_v25 = vadd.f32 %v753_v11, %v136_v22  ;;  %v346_v26 = vadd.f32 %v749_v8, %v137_v23  ;;  %v139_v28 = vld [vmem:[#allocation2 + $0x328] sm:$0xff] }
  0x4c   :  { %513 = vst [vmem:[#allocation7 + $0x250] sm:$0xff] %v321_v38  ;;  %514 = vst [vmem:[#allocation7 + $0x258] sm:$0xff] %v322_v39  ;;  %v347_v27 = vadd.f32 %v751_v9, %v138_v24  ;;  %v140_v29 = vld [vmem:[#allocation2 + $0x330] sm:$0xff]  ;;  %v141_v30 = vld [vmem:[#allocation2 + $0x338] sm:$0xff]  ;;  %v348_v31 = vadd.f32 %v753_v11, %v139_v28 }
  0x4d   :  { %515 = vst [vmem:[#allocation7 + $0x260] sm:$0xff] %v323_v40  ;;  %516 = vst [vmem:[#allocation7 + $0x268] sm:$0xff] %v324_v44  ;;  %v349_v32 = vadd.f32 %v749_v8, %v140_v29  ;;  %v350_v33 = vadd.f32 %v751_v9, %v141_v30  ;;  %v142_v34 = vld [vmem:[#allocation2 + $0x340] sm:$0xff]  ;;  %v143_v35 = vld [vmem:[#allocation2 + $0x348] sm:$0xff] }
  0x4e   :  { %517 = vst [vmem:[#allocation7 + $0x270] sm:$0xff] %v325_v45  ;;  %518 = vst [vmem:[#allocation7 + $0x278] sm:$0xff] %v326_v46  ;;  %v144_v36 = vld [vmem:[#allocation2 + $0x350] sm:$0xff]  ;;  %v351_v37 = vadd.f32 %v753_v11, %v142_v34  ;;  %v352_v38 = vadd.f32 %v749_v8, %v143_v35  ;;  %v145_v40 = vld [vmem:[#allocation2 + $0x358] sm:$0xff] }
  0x4f   :  { %519 = vst [vmem:[#allocation7 + $0x280] sm:$0xff] %v327_v50  ;;  %520 = vst [vmem:[#allocation7 + $0x288] sm:$0xff] %v328_v51  ;;  %v353_v39 = vadd.f32 %v751_v9, %v144_v36  ;;  %v146_v41 = vld [vmem:[#allocation2 + $0x360] sm:$0xff]  ;;  %v147_v42 = vld [vmem:[#allocation2 + $0x368] sm:$0xff]  ;;  %v354_v43 = vadd.f32 %v753_v11, %v145_v40 }
  0x50   :  { %521 = vst [vmem:[#allocation7 + $0x290] sm:$0xff] %v329_v52  ;;  %522 = vst [vmem:[#allocation7 + $0x298] sm:$0xff] %v330_v56  ;;  %v355_v44 = vadd.f32 %v749_v8, %v146_v41  ;;  %v356_v45 = vadd.f32 %v751_v9, %v147_v42  ;;  %v148_v46 = vld [vmem:[#allocation2 + $0x370] sm:$0xff]  ;;  %v149_v47 = vld [vmem:[#allocation2 + $0x378] sm:$0xff] }
  0x51   :  { %523 = vst [vmem:[#allocation7 + $0x2a0] sm:$0xff] %v331_v57  ;;  %524 = vst [vmem:[#allocation7 + $0x2a8] sm:$0xff] %v332_v58  ;;  %v150_v48 = vld [vmem:[#allocation2 + $0x380] sm:$0xff]  ;;  %v357_v49 = vadd.f32 %v753_v11, %v148_v46  ;;  %v358_v50 = vadd.f32 %v749_v8, %v149_v47  ;;  %v151_v52 = vld [vmem:[#allocation2 + $0x388] sm:$0xff] }
  0x52   :  { %525 = vst [vmem:[#allocation7 + $0x2b0] sm:$0xff] %v333_v62  ;;  %526 = vst [vmem:[#allocation7 + $0x2b8] sm:$0xff] %v334_v63  ;;  %v359_v51 = vadd.f32 %v751_v9, %v150_v48  ;;  %v152_v53 = vld [vmem:[#allocation2 + $0x390] sm:$0xff]  ;;  %v153_v54 = vld [vmem:[#allocation2 + $0x398] sm:$0xff]  ;;  %v360_v55 = vadd.f32 %v753_v11, %v151_v52 }
  0x53   :  { %527 = vst [vmem:[#allocation7 + $0x2c0] sm:$0xff] %v335_v0  ;;  %528 = vst [vmem:[#allocation7 + $0x2c8] sm:$0xff] %v336_v4  ;;  %v361_v56 = vadd.f32 %v749_v8, %v152_v53  ;;  %v362_v57 = vadd.f32 %v751_v9, %v153_v54  ;;  %v154_v58 = vld [vmem:[#allocation2 + $0x3a0] sm:$0xff]  ;;  %v155_v59 = vld [vmem:[#allocation2 + $0x3a8] sm:$0xff] }
  0x54   :  { %529 = vst [vmem:[#allocation7 + $0x2d0] sm:$0xff] %v337_v5  ;;  %530 = vst [vmem:[#allocation7 + $0x2d8] sm:$0xff] %v338_v6  ;;  %v156_v60 = vld [vmem:[#allocation2 + $0x3b0] sm:$0xff]  ;;  %v363_v61 = vadd.f32 %v753_v11, %v154_v58  ;;  %v364_v62 = vadd.f32 %v749_v8, %v155_v59  ;;  %v157_v0 = vld [vmem:[#allocation2 + $0x3b8] sm:$0xff] }
  0x55   :  { %531 = vst [vmem:[#allocation7 + $0x2e0] sm:$0xff] %v339_v13  ;;  %532 = vst [vmem:[#allocation7 + $0x2e8] sm:$0xff] %v340_v14  ;;  %v365_v63 = vadd.f32 %v751_v9, %v156_v60  ;;  %v158_v1 = vld [vmem:[#allocation2 + $0x3c0] sm:$0xff]  ;;  %v159_v2 = vld [vmem:[#allocation2 + $0x3c8] sm:$0xff]  ;;  %v366_v3 = vadd.f32 %v753_v11, %v157_v0 }
  0x56   :  { %533 = vst [vmem:[#allocation7 + $0x2f0] sm:$0xff] %v341_v15  ;;  %534 = vst [vmem:[#allocation7 + $0x2f8] sm:$0xff] %v342_v19  ;;  %v367_v4 = vadd.f32 %v749_v8, %v158_v1  ;;  %v368_v5 = vadd.f32 %v751_v9, %v159_v2  ;;  %v160_v6 = vld [vmem:[#allocation2 + $0x3d0] sm:$0xff]  ;;  %v161_v7 = vld [vmem:[#allocation2 + $0x3d8] sm:$0xff] }
  0x57   :  { %535 = vst [vmem:[#allocation7 + $0x300] sm:$0xff] %v343_v20  ;;  %536 = vst [vmem:[#allocation7 + $0x308] sm:$0xff] %v344_v21  ;;  %v162_v10 = vld [vmem:[#allocation2 + $0x3e0] sm:$0xff]  ;;  %v369_v12 = vadd.f32 %v753_v11, %v160_v6  ;;  %v370_v13 = vadd.f32 %v749_v8, %v161_v7  ;;  %v163_v15 = vld [vmem:[#allocation2 + $0x3e8] sm:$0xff] }
  0x58   :  { %537 = vst [vmem:[#allocation7 + $0x310] sm:$0xff] %v345_v25  ;;  %538 = vst [vmem:[#allocation7 + $0x318] sm:$0xff] %v346_v26  ;;  %v371_v14 = vadd.f32 %v751_v9, %v162_v10  ;;  %v164_v16 = vld [vmem:[#allocation2 + $0x3f0] sm:$0xff]  ;;  %v165_v17 = vld [vmem:[#allocation2 + $0x3f8] sm:$0xff]  ;;  %v372_v18 = vadd.f32 %v753_v11, %v163_v15 }
  0x59   :  { %539 = vst [vmem:[#allocation7 + $0x320] sm:$0xff] %v347_v27  ;;  %540 = vst [vmem:[#allocation7 + $0x328] sm:$0xff] %v348_v31  ;;  %v373_v19 = vadd.f32 %v749_v8, %v164_v16  ;;  %v374_v20 = vadd.f32 %v751_v9, %v165_v17  ;;  %v166_v21 = vld [vmem:[#allocation2 + $0x400] sm:$0xff]  ;;  %v167_v22 = vld [vmem:[#allocation2 + $0x408] sm:$0xff] }
  0x5a   :  { %541 = vst [vmem:[#allocation7 + $0x330] sm:$0xff] %v349_v32  ;;  %542 = vst [vmem:[#allocation7 + $0x338] sm:$0xff] %v350_v33  ;;  %v168_v23 = vld [vmem:[#allocation2 + $0x410] sm:$0xff]  ;;  %v375_v24 = vadd.f32 %v753_v11, %v166_v21  ;;  %v376_v25 = vadd.f32 %v749_v8, %v167_v22  ;;  %v169_v27 = vld [vmem:[#allocation2 + $0x418] sm:$0xff] }
  0x5b   :  { %543 = vst [vmem:[#allocation7 + $0x340] sm:$0xff] %v351_v37  ;;  %544 = vst [vmem:[#allocation7 + $0x348] sm:$0xff] %v352_v38  ;;  %v377_v26 = vadd.f32 %v751_v9, %v168_v23  ;;  %v170_v28 = vld [vmem:[#allocation2 + $0x420] sm:$0xff]  ;;  %v171_v29 = vld [vmem:[#allocation2 + $0x428] sm:$0xff]  ;;  %v378_v30 = vadd.f32 %v753_v11, %v169_v27 }
  0x5c   :  { %545 = vst [vmem:[#allocation7 + $0x350] sm:$0xff] %v353_v39  ;;  %546 = vst [vmem:[#allocation7 + $0x358] sm:$0xff] %v354_v43  ;;  %v379_v31 = vadd.f32 %v749_v8, %v170_v28  ;;  %v380_v32 = vadd.f32 %v751_v9, %v171_v29  ;;  %v172_v33 = vld [vmem:[#allocation2 + $0x430] sm:$0xff]  ;;  %v173_v34 = vld [vmem:[#allocation2 + $0x438] sm:$0xff] }
  0x5d   :  { %547 = vst [vmem:[#allocation7 + $0x360] sm:$0xff] %v355_v44  ;;  %548 = vst [vmem:[#allocation7 + $0x368] sm:$0xff] %v356_v45  ;;  %v174_v35 = vld [vmem:[#allocation2 + $0x440] sm:$0xff]  ;;  %v381_v36 = vadd.f32 %v753_v11, %v172_v33  ;;  %v382_v37 = vadd.f32 %v749_v8, %v173_v34  ;;  %v175_v39 = vld [vmem:[#allocation2 + $0x448] sm:$0xff] }
  0x5e   :  { %549 = vst [vmem:[#allocation7 + $0x370] sm:$0xff] %v357_v49  ;;  %550 = vst [vmem:[#allocation7 + $0x378] sm:$0xff] %v358_v50  ;;  %v383_v38 = vadd.f32 %v751_v9, %v174_v35  ;;  %v176_v40 = vld [vmem:[#allocation2 + $0x450] sm:$0xff]  ;;  %v177_v41 = vld [vmem:[#allocation2 + $0x458] sm:$0xff]  ;;  %v384_v42 = vadd.f32 %v753_v11, %v175_v39 }
  0x5f   :  { %551 = vst [vmem:[#allocation7 + $0x380] sm:$0xff] %v359_v51  ;;  %552 = vst [vmem:[#allocation7 + $0x388] sm:$0xff] %v360_v55  ;;  %v385_v43 = vadd.f32 %v749_v8, %v176_v40  ;;  %v386_v44 = vadd.f32 %v751_v9, %v177_v41  ;;  %v178_v45 = vld [vmem:[#allocation2 + $0x460] sm:$0xff]  ;;  %v179_v46 = vld [vmem:[#allocation2 + $0x468] sm:$0xff] }
  0x60   :  { %553 = vst [vmem:[#allocation7 + $0x390] sm:$0xff] %v361_v56  ;;  %554 = vst [vmem:[#allocation7 + $0x398] sm:$0xff] %v362_v57  ;;  %v180_v47 = vld [vmem:[#allocation2 + $0x470] sm:$0xff]  ;;  %v387_v48 = vadd.f32 %v753_v11, %v178_v45  ;;  %v388_v49 = vadd.f32 %v749_v8, %v179_v46  ;;  %v181_v51 = vld [vmem:[#allocation2 + $0x478] sm:$0xff] }
  0x61   :  { %555 = vst [vmem:[#allocation7 + $0x3a0] sm:$0xff] %v363_v61  ;;  %556 = vst [vmem:[#allocation7 + $0x3a8] sm:$0xff] %v364_v62  ;;  %v389_v50 = vadd.f32 %v751_v9, %v180_v47  ;;  %v182_v52 = vld [vmem:[#allocation2 + $0x480] sm:$0xff]  ;;  %v183_v53 = vld [vmem:[#allocation2 + $0x488] sm:$0xff]  ;;  %v390_v54 = vadd.f32 %v753_v11, %v181_v51 }
  0x62   :  { %557 = vst [vmem:[#allocation7 + $0x3b0] sm:$0xff] %v365_v63  ;;  %558 = vst [vmem:[#allocation7 + $0x3b8] sm:$0xff] %v366_v3  ;;  %v391_v55 = vadd.f32 %v749_v8, %v182_v52  ;;  %v392_v56 = vadd.f32 %v751_v9, %v183_v53  ;;  %v184_v57 = vld [vmem:[#allocation2 + $0x490] sm:$0xff]  ;;  %v185_v58 = vld [vmem:[#allocation2 + $0x498] sm:$0xff] }
  0x63   :  { %559 = vst [vmem:[#allocation7 + $0x3c0] sm:$0xff] %v367_v4  ;;  %560 = vst [vmem:[#allocation7 + $0x3c8] sm:$0xff] %v368_v5  ;;  %v186_v59 = vld [vmem:[#allocation2 + $0x4a0] sm:$0xff]  ;;  %v393_v60 = vadd.f32 %v753_v11, %v184_v57  ;;  %v394_v61 = vadd.f32 %v749_v8, %v185_v58  ;;  %v187_v63 = vld [vmem:[#allocation2 + $0x4a8] sm:$0xff] }
  0x64   :  { %561 = vst [vmem:[#allocation7 + $0x3d0] sm:$0xff] %v369_v12  ;;  %562 = vst [vmem:[#allocation7 + $0x3d8] sm:$0xff] %v370_v13  ;;  %v395_v62 = vadd.f32 %v751_v9, %v186_v59  ;;  %v188_v0 = vld [vmem:[#allocation2 + $0x4b0] sm:$0xff]  ;;  %v189_v1 = vld [vmem:[#allocation2 + $0x4b8] sm:$0xff]  ;;  %v396_v2 = vadd.f32 %v753_v11, %v187_v63 }
  0x65   :  { %563 = vst [vmem:[#allocation7 + $0x3e0] sm:$0xff] %v371_v14  ;;  %564 = vst [vmem:[#allocation7 + $0x3e8] sm:$0xff] %v372_v18  ;;  %v397_v3 = vadd.f32 %v749_v8, %v188_v0  ;;  %v398_v4 = vadd.f32 %v751_v9, %v189_v1  ;;  %v190_v5 = vld [vmem:[#allocation2 + $0x4c0] sm:$0xff]  ;;  %v191_v6 = vld [vmem:[#allocation2 + $0x4c8] sm:$0xff] }
  0x66   :  { %565 = vst [vmem:[#allocation7 + $0x3f0] sm:$0xff] %v373_v19  ;;  %566 = vst [vmem:[#allocation7 + $0x3f8] sm:$0xff] %v374_v20  ;;  %v192_v7 = vld [vmem:[#allocation2 + $0x4d0] sm:$0xff]  ;;  %v399_v10 = vadd.f32 %v753_v11, %v190_v5  ;;  %v400_v12 = vadd.f32 %v749_v8, %v191_v6  ;;  %v193_v14 = vld [vmem:[#allocation2 + $0x4d8] sm:$0xff] }
  0x67   :  { %567 = vst [vmem:[#allocation7 + $0x400] sm:$0xff] %v375_v24  ;;  %568 = vst [vmem:[#allocation7 + $0x408] sm:$0xff] %v376_v25  ;;  %v401_v13 = vadd.f32 %v751_v9, %v192_v7  ;;  %v194_v15 = vld [vmem:[#allocation2 + $0x4e0] sm:$0xff]  ;;  %v195_v16 = vld [vmem:[#allocation2 + $0x4e8] sm:$0xff]  ;;  %v402_v17 = vadd.f32 %v753_v11, %v193_v14 }
  0x68   :  { %569 = vst [vmem:[#allocation7 + $0x410] sm:$0xff] %v377_v26  ;;  %570 = vst [vmem:[#allocation7 + $0x418] sm:$0xff] %v378_v30  ;;  %v403_v18 = vadd.f32 %v749_v8, %v194_v15  ;;  %v404_v19 = vadd.f32 %v751_v9, %v195_v16  ;;  %v196_v20 = vld [vmem:[#allocation2 + $0x4f0] sm:$0xff]  ;;  %v197_v21 = vld [vmem:[#allocation2 + $0x4f8] sm:$0xff] }
  0x69   :  { %571 = vst [vmem:[#allocation7 + $0x420] sm:$0xff] %v379_v31  ;;  %572 = vst [vmem:[#allocation7 + $0x428] sm:$0xff] %v380_v32  ;;  %v198_v22 = vld [vmem:[#allocation2 + $0x500] sm:$0xff]  ;;  %v405_v23 = vadd.f32 %v753_v11, %v196_v20  ;;  %v406_v24 = vadd.f32 %v749_v8, %v197_v21  ;;  %v199_v26 = vld [vmem:[#allocation2 + $0x508] sm:$0xff] }
  0x6a   :  { %573 = vst [vmem:[#allocation7 + $0x430] sm:$0xff] %v381_v36  ;;  %574 = vst [vmem:[#allocation7 + $0x438] sm:$0xff] %v382_v37  ;;  %v407_v25 = vadd.f32 %v751_v9, %v198_v22  ;;  %v200_v27 = vld [vmem:[#allocation2 + $0x510] sm:$0xff]  ;;  %v201_v28 = vld [vmem:[#allocation2 + $0x518] sm:$0xff]  ;;  %v408_v29 = vadd.f32 %v753_v11, %v199_v26 }
  0x6b   :  { %575 = vst [vmem:[#allocation7 + $0x440] sm:$0xff] %v383_v38  ;;  %576 = vst [vmem:[#allocation7 + $0x448] sm:$0xff] %v384_v42  ;;  %v409_v30 = vadd.f32 %v749_v8, %v200_v27  ;;  %v410_v31 = vadd.f32 %v751_v9, %v201_v28  ;;  %v202_v32 = vld [vmem:[#allocation2 + $0x520] sm:$0xff]  ;;  %v203_v33 = vld [vmem:[#allocation2 + $0x528] sm:$0xff] }
  0x6c   :  { %577 = vst [vmem:[#allocation7 + $0x450] sm:$0xff] %v385_v43  ;;  %578 = vst [vmem:[#allocation7 + $0x458] sm:$0xff] %v386_v44  ;;  %v204_v34 = vld [vmem:[#allocation2 + $0x530] sm:$0xff]  ;;  %v411_v35 = vadd.f32 %v753_v11, %v202_v32  ;;  %v412_v36 = vadd.f32 %v749_v8, %v203_v33  ;;  %v205_v38 = vld [vmem:[#allocation2 + $0x538] sm:$0xff] }
  0x6d   :  { %579 = vst [vmem:[#allocation7 + $0x460] sm:$0xff] %v387_v48  ;;  %580 = vst [vmem:[#allocation7 + $0x468] sm:$0xff] %v388_v49  ;;  %v413_v37 = vadd.f32 %v751_v9, %v204_v34  ;;  %v206_v39 = vld [vmem:[#allocation2 + $0x540] sm:$0xff]  ;;  %v207_v40 = vld [vmem:[#allocation2 + $0x548] sm:$0xff]  ;;  %v414_v41 = vadd.f32 %v753_v11, %v205_v38 }
  0x6e   :  { %581 = vst [vmem:[#allocation7 + $0x470] sm:$0xff] %v389_v50  ;;  %582 = vst [vmem:[#allocation7 + $0x478] sm:$0xff] %v390_v54  ;;  %v415_v42 = vadd.f32 %v749_v8, %v206_v39  ;;  %v416_v43 = vadd.f32 %v751_v9, %v207_v40  ;;  %v208_v44 = vld [vmem:[#allocation2 + $0x550] sm:$0xff]  ;;  %v209_v45 = vld [vmem:[#allocation2 + $0x558] sm:$0xff] }
  0x6f   :  { %583 = vst [vmem:[#allocation7 + $0x480] sm:$0xff] %v391_v55  ;;  %584 = vst [vmem:[#allocation7 + $0x488] sm:$0xff] %v392_v56  ;;  %v210_v46 = vld [vmem:[#allocation2 + $0x560] sm:$0xff]  ;;  %v417_v47 = vadd.f32 %v753_v11, %v208_v44  ;;  %v418_v48 = vadd.f32 %v749_v8, %v209_v45  ;;  %v211_v50 = vld [vmem:[#allocation2 + $0x568] sm:$0xff] }
  0x70   :  { %585 = vst [vmem:[#allocation7 + $0x490] sm:$0xff] %v393_v60  ;;  %586 = vst [vmem:[#allocation7 + $0x498] sm:$0xff] %v394_v61  ;;  %v419_v49 = vadd.f32 %v751_v9, %v210_v46  ;;  %v212_v51 = vld [vmem:[#allocation2 + $0x570] sm:$0xff]  ;;  %v213_v52 = vld [vmem:[#allocation2 + $0x578] sm:$0xff]  ;;  %v420_v53 = vadd.f32 %v753_v11, %v211_v50 }
  0x71   :  { %587 = vst [vmem:[#allocation7 + $0x4a0] sm:$0xff] %v395_v62  ;;  %588 = vst [vmem:[#allocation7 + $0x4a8] sm:$0xff] %v396_v2  ;;  %v421_v54 = vadd.f32 %v749_v8, %v212_v51  ;;  %v422_v55 = vadd.f32 %v751_v9, %v213_v52  ;;  %v214_v56 = vld [vmem:[#allocation2 + $0x580] sm:$0xff]  ;;  %v215_v57 = vld [vmem:[#allocation2 + $0x588] sm:$0xff] }
  0x72   :  { %589 = vst [vmem:[#allocation7 + $0x4b0] sm:$0xff] %v397_v3  ;;  %590 = vst [vmem:[#allocation7 + $0x4b8] sm:$0xff] %v398_v4  ;;  %v216_v58 = vld [vmem:[#allocation2 + $0x590] sm:$0xff]  ;;  %v423_v59 = vadd.f32 %v753_v11, %v214_v56  ;;  %v424_v60 = vadd.f32 %v749_v8, %v215_v57  ;;  %v217_v62 = vld [vmem:[#allocation2 + $0x598] sm:$0xff] }
  0x73   :  { %591 = vst [vmem:[#allocation7 + $0x4c0] sm:$0xff] %v399_v10  ;;  %592 = vst [vmem:[#allocation7 + $0x4c8] sm:$0xff] %v400_v12  ;;  %v425_v61 = vadd.f32 %v751_v9, %v216_v58  ;;  %v218_v63 = vld [vmem:[#allocation2 + $0x5a0] sm:$0xff]  ;;  %v219_v0 = vld [vmem:[#allocation2 + $0x5a8] sm:$0xff]  ;;  %v426_v1 = vadd.f32 %v753_v11, %v217_v62 }
  0x74   :  { %593 = vst [vmem:[#allocation7 + $0x4d0] sm:$0xff] %v401_v13  ;;  %594 = vst [vmem:[#allocation7 + $0x4d8] sm:$0xff] %v402_v17  ;;  %v427_v2 = vadd.f32 %v749_v8, %v218_v63  ;;  %v428_v3 = vadd.f32 %v751_v9, %v219_v0  ;;  %v220_v4 = vld [vmem:[#allocation2 + $0x5b0] sm:$0xff]  ;;  %v221_v5 = vld [vmem:[#allocation2 + $0x5b8] sm:$0xff] }
  0x75   :  { %595 = vst [vmem:[#allocation7 + $0x4e0] sm:$0xff] %v403_v18  ;;  %596 = vst [vmem:[#allocation7 + $0x4e8] sm:$0xff] %v404_v19  ;;  %v222_v6 = vld [vmem:[#allocation2 + $0x5c0] sm:$0xff]  ;;  %v429_v7 = vadd.f32 %v753_v11, %v220_v4  ;;  %v430_v10 = vadd.f32 %v749_v8, %v221_v5  ;;  %v223_v13 = vld [vmem:[#allocation2 + $0x5c8] sm:$0xff] }
  0x76   :  { %597 = vst [vmem:[#allocation7 + $0x4f0] sm:$0xff] %v405_v23  ;;  %598 = vst [vmem:[#allocation7 + $0x4f8] sm:$0xff] %v406_v24  ;;  %v431_v12 = vadd.f32 %v751_v9, %v222_v6  ;;  %v224_v14 = vld [vmem:[#allocation2 + $0x5d0] sm:$0xff]  ;;  %v225_v15 = vld [vmem:[#allocation2 + $0x5d8] sm:$0xff]  ;;  %v432_v16 = vadd.f32 %v753_v11, %v223_v13 }
  0x77   :  { %599 = vst [vmem:[#allocation7 + $0x500] sm:$0xff] %v407_v25  ;;  %600 = vst [vmem:[#allocation7 + $0x508] sm:$0xff] %v408_v29  ;;  %v433_v17 = vadd.f32 %v749_v8, %v224_v14  ;;  %v434_v18 = vadd.f32 %v751_v9, %v225_v15  ;;  %v226_v19 = vld [vmem:[#allocation2 + $0x5e0] sm:$0xff]  ;;  %v227_v20 = vld [vmem:[#allocation2 + $0x5e8] sm:$0xff] }
  0x78   :  { %601 = vst [vmem:[#allocation7 + $0x510] sm:$0xff] %v409_v30  ;;  %602 = vst [vmem:[#allocation7 + $0x518] sm:$0xff] %v410_v31  ;;  %v228_v21 = vld [vmem:[#allocation2 + $0x5f0] sm:$0xff]  ;;  %v435_v22 = vadd.f32 %v753_v11, %v226_v19  ;;  %v436_v23 = vadd.f32 %v749_v8, %v227_v20  ;;  %v229_v25 = vld [vmem:[#allocation2 + $0x5f8] sm:$0xff] }
  0x79   :  { %603 = vst [vmem:[#allocation7 + $0x520] sm:$0xff] %v411_v35  ;;  %604 = vst [vmem:[#allocation7 + $0x528] sm:$0xff] %v412_v36  ;;  %v437_v24 = vadd.f32 %v751_v9, %v228_v21  ;;  %v438_v26 = vadd.f32 %v753_v11, %v229_v25 }
  0x7a   :  { %605 = vst [vmem:[#allocation7 + $0x530] sm:$0xff] %v413_v37  ;;  %606 = vst [vmem:[#allocation7 + $0x538] sm:$0xff] %v414_v41 }
  0x7b   :  { %607 = vst [vmem:[#allocation7 + $0x540] sm:$0xff] %v415_v42  ;;  %608 = vst [vmem:[#allocation7 + $0x548] sm:$0xff] %v416_v43 }
  0x7c   :  { %609 = vst [vmem:[#allocation7 + $0x550] sm:$0xff] %v417_v47  ;;  %610 = vst [vmem:[#allocation7 + $0x558] sm:$0xff] %v418_v48 }
  0x7d   :  { %611 = vst [vmem:[#allocation7 + $0x560] sm:$0xff] %v419_v49  ;;  %612 = vst [vmem:[#allocation7 + $0x568] sm:$0xff] %v420_v53 }
  0x7e   :  { %613 = vst [vmem:[#allocation7 + $0x570] sm:$0xff] %v421_v54  ;;  %614 = vst [vmem:[#allocation7 + $0x578] sm:$0xff] %v422_v55 }
  0x7f   :  { %615 = vst [vmem:[#allocation7 + $0x580] sm:$0xff] %v423_v59  ;;  %616 = vst [vmem:[#allocation7 + $0x588] sm:$0xff] %v424_v60 }
  0x80   :  { %617 = vst [vmem:[#allocation7 + $0x590] sm:$0xff] %v425_v61  ;;  %618 = vst [vmem:[#allocation7 + $0x598] sm:$0xff] %v426_v1 }
  0x81   :  { %619 = vst [vmem:[#allocation7 + $0x5a0] sm:$0xff] %v427_v2  ;;  %620 = vst [vmem:[#allocation7 + $0x5a8] sm:$0xff] %v428_v3 }
  0x82   :  { %621 = vst [vmem:[#allocation7 + $0x5b0] sm:$0xff] %v429_v7  ;;  %622 = vst [vmem:[#allocation7 + $0x5b8] sm:$0xff] %v430_v10 }
  0x83   :  { %623 = vst [vmem:[#allocation7 + $0x5c0] sm:$0xff] %v431_v12  ;;  %624 = vst [vmem:[#allocation7 + $0x5c8] sm:$0xff] %v432_v16 }
  0x84   :  { %625 = vst [vmem:[#allocation7 + $0x5d0] sm:$0xff] %v433_v17  ;;  %626 = vst [vmem:[#allocation7 + $0x5d8] sm:$0xff] %v434_v18 }
  0x85   :  { %627 = vst [vmem:[#allocation7 + $0x5e0] sm:$0xff] %v435_v22  ;;  %628 = vst [vmem:[#allocation7 + $0x5e8] sm:$0xff] %v436_v23 }
  0x86   :  { %629 = vst [vmem:[#allocation7 + $0x5f0] sm:$0xff] %v437_v24  ;;  %630 = vst [vmem:[#allocation7 + $0x5f8] sm:$0xff] %v438_v26 }
  0x87   :  { %705 = shalt.err (!%p702_p0)
}
  0x88   :  { %642 = dma.vmem_to_hbm [thread:$0]  %s637_s1, 24576, %s955_s2, [#allocation4], %s721_s12, %s721_s12, %s722_s13  }
  0x89   :  { %718 = dma.done.wait [#allocation4], 24576  }
  0x8a   :  { %719 = vsyncadd [#allocation4], 4294942720 }
  0x8b   :  { %646 = vsyncpa [#allocation3], 1 }
  0x8c   :  { %647 = vsyncpa [#allocation6], 1 }
  0x8d   :  { %648 = vsyncpa [#allocation4], 1 }

</bundles_post_ra>
